<compile_context>
chip_gen: v6e
topology: v6e:2x2x1
jax: 0.10.0
libtpu: 0.0.40
codegen_flags: <defaults>
</compile_context>

<pallas_src>
import functools

import jax
import jax.numpy as jnp
from jax.experimental import pallas as pl
from jax.experimental.pallas import tpu as pltpu


_LANES = 128
_F32_MIN = float(jnp.finfo(jnp.float32).min)


def _encode_topk_kernel(logits_ref, vals_ref, idx_ref, *, topk: int):
    # logits tile: [T, Vp]  (T rows of the flattened (B*S) axis, padded vocab)
    T, Vp = logits_ref.shape
    C = Vp // _LANES
    neg_inf = jnp.float32(-jnp.inf)
    big_col = jnp.float32(Vp)  # larger than any valid column id

    if C > topk:
        # ---- stage 1: per-lane running top-k folded over 128-lane chunks ----
        # Pure VPU compare/select; only k*[T,128] state + one chunk live at a
        # time (the full [T,Vp] f32 cast is never materialized).
        lane = jax.lax.broadcasted_iota(jnp.int32, (T, _LANES), 1).astype(jnp.float32)
        slot_x = [jnp.full((T, _LANES), neg_inf, jnp.float32) for _ in range(topk)]
        slot_c = [jnp.zeros((T, _LANES), jnp.float32) for _ in range(topk)]
        for c in range(C):
            new_x = logits_ref[:, c * _LANES:(c + 1) * _LANES].astype(jnp.float32)
            new_c = lane + jnp.float32(c * _LANES)
            # sorted (descending) bubble-insert; on exact ties the earlier
            # (lower-index) element stays higher, matching lax.top_k.
            for r in range(topk):
                gt = new_x > slot_x[r]
                keep_x = jnp.where(gt, new_x, slot_x[r])
                down_x = jnp.where(gt, slot_x[r], new_x)
                keep_c = jnp.where(gt, new_c, slot_c[r])
                down_c = jnp.where(gt, slot_c[r], new_c)
                slot_x[r], new_x = keep_x, down_x
                slot_c[r], new_c = keep_c, down_c
        cand_x = jnp.concatenate(slot_x, axis=-1)      # [T, 128*topk]
        cand_c = jnp.concatenate(slot_c, axis=-1)      # exact column ids (f32)
    else:
        # Small vocab: every column is already a candidate.
        cand_x = logits_ref[...].astype(jnp.float32)   # [T, Vp]
        cand_c = jax.lax.broadcasted_iota(jnp.int32, (T, Vp), 1).astype(jnp.float32)

    # ---- stage 2: exact top-k extraction on the small candidate slab ----
    # Per rank: one max-reduce (exact value), one masked min-reduce (lowest
    # column among exact ties), one knockout select.  All reductions are over
    # <= max(Vp_small, 128*topk) lanes, independent of the full vocab.
    top_x, top_c = [], []
    work = cand_x
    for r in range(topk):
        vmax = jnp.max(work, axis=-1, keepdims=True)                        # [T,1]
        csel = jnp.min(jnp.where(work == vmax, cand_c, big_col),
                       axis=-1, keepdims=True)                              # [T,1]
        top_x.append(vmax)
        top_c.append(csel)
        if r + 1 < topk:
            work = jnp.where(cand_c == csel, neg_inf, work)  # column ids are unique

    m = top_x[0]  # exact row max -> stability shift for free

    # ---- softmax denominator (only full-row pass besides the fold) ----
    if C > topk:
        den = jnp.zeros((T, _LANES), jnp.float32)
        for c in range(C):
            xc = logits_ref[:, c * _LANES:(c + 1) * _LANES].astype(jnp.float32)
            den = den + jnp.exp(xc - m)          # padded cols underflow to 0
        denom = jnp.sum(den, axis=-1, keepdims=True)   # 128-wide reduce only
    else:
        denom = jnp.sum(jnp.exp(cand_x - m), axis=-1, keepdims=True)

    sel_x = jnp.concatenate(top_x, axis=-1)            # [T, topk] exact logits
    sel_c = jnp.concatenate(top_c, axis=-1)            # [T, topk] exact indices
    vals_ref[...] = jnp.exp(sel_x - m) / denom         # exact softmax probs
    idx_ref[...] = sel_c                               # float32 (torch.cat promotion)


def encode_topk(logits: jax.Array, topk: int = 4, row_tile: int | None = None):
    """Pallas equivalent of Model.encode_topk.

    logits: [B, S, V] float array (bf16/f32; kept in storage dtype through the
            BlockSpec and cast to f32 per chunk inside the kernel).
    returns: [B, S, 2*topk] float32 = [topk_probs | topk_indices]
             (indices exact as float32 for V <= 2**24).
    """
    B, S, V = logits.shape
    assert 0 < topk <= V, (topk, V)
    rows = B * S
    flat = logits.reshape(rows, V)

    # Pad the vocab to a multiple of 128 lanes with a huge-negative filler
    # (contributes 0 to the denominator, never selected while topk <= V).
    Vp = ((V + _LANES - 1) // _LANES) * _LANES
    if Vp != V:
        flat = jnp.pad(flat, ((0, 0), (0, Vp - V)), constant_values=_F32_MIN)

    # Generation-aware VMEM sizing (v7x has 64 MiB, v5e/v6e have 128 MiB).
    try:
        vmem_cap = int(pltpu.get_tpu_info().vmem_capacity_bytes)
    except Exception:  # pragma: no cover - conservative (v7x) fallback
        vmem_cap = 64 * 1024 * 1024
    vmem_budget = max(8 << 20, int(vmem_cap * 0.30))
    vmem_limit = max(32 << 20, int(vmem_cap * 0.75))

    if row_tile is None:
        in_bytes = flat.dtype.itemsize
        cand_w = min(Vp, _LANES * topk)
        per_row = (2 * in_bytes * Vp                 # double-buffered input block
                   + 4 * 4 * cand_w                  # live f32 candidate-slab temporaries
                   + 2 * (topk + 1) * _LANES * 4)    # fold running state / denom lanes
        rt = max(8, vmem_budget // per_row)
        rt = min(int(rt), 4096)                      # raised cap for 128 MiB parts
        if rows >= 16:
            # Keep >= 2 grid steps so the "parallel" axis can use both v7x TCs.
            rt = min(rt, (((rows + 1) // 2) + 7) // 8 * 8)
        rt = min(rt, ((rows + 7) // 8) * 8)
        row_tile = max(8, (int(rt) // 8) * 8)

    padded_rows = ((rows + row_tile - 1) // row_tile) * row_tile
    if padded_rows != rows:
        flat = jnp.pad(flat, ((0, padded_rows - rows), (0, 0)))

    kernel = functools.partial(_encode_topk_kernel, topk=topk)

    vals, idxs = pl.pallas_call(
        kernel,
        out_shape=(jax.ShapeDtypeStruct((padded_rows, topk), jnp.float32),
                   jax.ShapeDtypeStruct((padded_rows, topk), jnp.float32)),
        grid_spec=pltpu.PrefetchScalarGridSpec(
            num_scalar_prefetch=0,
            grid=(padded_rows // row_tile,),
            in_specs=[pl.BlockSpec((row_tile, Vp), lambda i: (i, 0))],
            out_specs=[pl.BlockSpec((row_tile, topk), lambda i: (i, 0)),
                       pl.BlockSpec((row_tile, topk), lambda i: (i, 0))],
        ),
        compiler_params=pltpu.CompilerParams(
            dimension_semantics=("parallel",),
            vmem_limit_bytes=vmem_limit,
        ),
    )(flat)

    if padded_rows != rows:
        vals = vals[:rows]
        idxs = idxs[:rows]
    out = jnp.concatenate([vals, idxs], axis=-1)
    return out.reshape(B, S, 2 * topk)


def _reference_encode_topk(logits, topk):
    probs = jax.nn.softmax(logits.astype(jnp.float32), axis=-1)
    topv, topi = jax.lax.top_k(probs, topk)
    return jnp.concatenate([topv, topi.astype(jnp.float32)], axis=-1)


if __name__ == "__main__":
    key = jax.random.PRNGKey(0)

    # Small vocab (direct path): batch=2, seq=8, vocab=128, topk=4
    B, S, V, TOPK = 2, 8, 128, 4
    k1, k2 = jax.random.split(key)
    logits_small = jax.random.normal(k1, (B, S, V), dtype=jnp.float32)
    out_small = jax.block_until_ready(encode_topk(logits_small, topk=TOPK))
    ref_small = _reference_encode_topk(logits_small, TOPK)
    assert out_small.shape == (B, S, 2 * TOPK), out_small.shape
    assert out_small.dtype == jnp.float32
    assert jnp.allclose(out_small, ref_small, atol=1e-5, rtol=1e-4), "small-V mismatch"

    # Medium vocab (per-lane fold path): vocab=1024 (> 128*topk chunks)
    V2 = 1024
    logits_med = jax.random.normal(k2, (B, S, V2), dtype=jnp.float32)
    out_med = jax.block_until_ready(encode_topk(logits_med, topk=TOPK))
    ref_med = _reference_encode_topk(logits_med, TOPK)
    assert out_med.shape == (B, S, 2 * TOPK), out_med.shape
    assert jnp.allclose(out_med, ref_med, atol=1e-5, rtol=1e-4), "medium-V mismatch"

    print("KERNEL_OK")
</pallas_src>

<mosaic_0001>
module attributes {stable_mosaic.version = 11 : i64} {
  func.func @_encode_topk_kernel(%arg0: i32, %arg1: memref<8x128xf32, #tpu.memory_space<vmem>>, %arg2: memref<8x4xf32, #tpu.memory_space<vmem>>, %arg3: memref<8x4xf32, #tpu.memory_space<vmem>>) attributes {dimension_semantics = [#tpu.dimension_semantics<parallel>], iteration_bounds = array<i64: 2>, scalar_prefetch = 0 : i64, scratch_operands = 0 : i64, tpu.core_type = #tpu.core_type<tc>, window_params = [{transform_indices = @transform_0, window_bounds = array<i64: 8, 128>}, {transform_indices = @transform_1, window_bounds = array<i64: 8, 4>}, {transform_indices = @transform_2, window_bounds = array<i64: 8, 4>}]} {
    %c0 = arith.constant 0 : index
    %c0_0 = arith.constant 0 : index
    %0 = vector.load %arg1[%c0, %c0_0] : memref<8x128xf32, #tpu.memory_space<vmem>>, vector<8x128xf32>
    %1 = tpu.iota {dimensions = array<i32: 1>} : vector<8x128xi32>
    %2 = arith.sitofp %1 : vector<8x128xi32> to vector<8x128xf32>
    %cst = arith.constant dense<0xFF800000> : vector<8xf32>
    %3 = vector.multi_reduction <maximumf>, %0, %cst [1] : vector<8x128xf32> to vector<8xf32>
    %4 = vector.shape_cast %3 : vector<8xf32> to vector<8x1xf32>
    %5 = vector.broadcast %4 : vector<8x1xf32> to vector<8x128xf32>
    %6 = arith.cmpf oeq, %0, %5 : vector<8x128xf32>
    %cst_1 = arith.constant 1.280000e+02 : f32
    %7 = vector.broadcast %cst_1 : f32 to vector<8x128xf32>
    %8 = arith.select %6, %2, %7 : vector<8x128xi1>, vector<8x128xf32>
    %cst_2 = arith.constant dense<0x7F800000> : vector<8xf32>
    %9 = vector.multi_reduction <minimumf>, %8, %cst_2 [1] : vector<8x128xf32> to vector<8xf32>
    %10 = vector.shape_cast %9 : vector<8xf32> to vector<8x1xf32>
    %11 = vector.broadcast %10 : vector<8x1xf32> to vector<8x128xf32>
    %12 = arith.cmpf oeq, %2, %11 : vector<8x128xf32>
    %cst_3 = arith.constant 0xFF800000 : f32
    %13 = vector.broadcast %cst_3 : f32 to vector<8x128xf32>
    %14 = arith.select %12, %13, %0 : vector<8x128xi1>, vector<8x128xf32>
    %cst_4 = arith.constant dense<0xFF800000> : vector<8xf32>
    %15 = vector.multi_reduction <maximumf>, %14, %cst_4 [1] : vector<8x128xf32> to vector<8xf32>
    %16 = vector.shape_cast %15 : vector<8xf32> to vector<8x1xf32>
    %17 = vector.broadcast %16 : vector<8x1xf32> to vector<8x128xf32>
    %18 = arith.cmpf oeq, %14, %17 : vector<8x128xf32>
    %cst_5 = arith.constant 1.280000e+02 : f32
    %19 = vector.broadcast %cst_5 : f32 to vector<8x128xf32>
    %20 = arith.select %18, %2, %19 : vector<8x128xi1>, vector<8x128xf32>
    %cst_6 = arith.constant dense<0x7F800000> : vector<8xf32>
    %21 = vector.multi_reduction <minimumf>, %20, %cst_6 [1] : vector<8x128xf32> to vector<8xf32>
    %22 = vector.shape_cast %21 : vector<8xf32> to vector<8x1xf32>
    %23 = vector.broadcast %22 : vector<8x1xf32> to vector<8x128xf32>
    %24 = arith.cmpf oeq, %2, %23 : vector<8x128xf32>
    %cst_7 = arith.constant 0xFF800000 : f32
    %25 = vector.broadcast %cst_7 : f32 to vector<8x128xf32>
    %26 = arith.select %24, %25, %14 : vector<8x128xi1>, vector<8x128xf32>
    %cst_8 = arith.constant dense<0xFF800000> : vector<8xf32>
    %27 = vector.multi_reduction <maximumf>, %26, %cst_8 [1] : vector<8x128xf32> to vector<8xf32>
    %28 = vector.shape_cast %27 : vector<8xf32> to vector<8x1xf32>
    %29 = vector.broadcast %28 : vector<8x1xf32> to vector<8x128xf32>
    %30 = arith.cmpf oeq, %26, %29 : vector<8x128xf32>
    %cst_9 = arith.constant 1.280000e+02 : f32
    %31 = vector.broadcast %cst_9 : f32 to vector<8x128xf32>
    %32 = arith.select %30, %2, %31 : vector<8x128xi1>, vector<8x128xf32>
    %cst_10 = arith.constant dense<0x7F800000> : vector<8xf32>
    %33 = vector.multi_reduction <minimumf>, %32, %cst_10 [1] : vector<8x128xf32> to vector<8xf32>
    %34 = vector.shape_cast %33 : vector<8xf32> to vector<8x1xf32>
    %35 = vector.broadcast %34 : vector<8x1xf32> to vector<8x128xf32>
    %36 = arith.cmpf oeq, %2, %35 : vector<8x128xf32>
    %cst_11 = arith.constant 0xFF800000 : f32
    %37 = vector.broadcast %cst_11 : f32 to vector<8x128xf32>
    %38 = arith.select %36, %37, %26 : vector<8x128xi1>, vector<8x128xf32>
    %cst_12 = arith.constant dense<0xFF800000> : vector<8xf32>
    %39 = vector.multi_reduction <maximumf>, %38, %cst_12 [1] : vector<8x128xf32> to vector<8xf32>
    %40 = vector.shape_cast %39 : vector<8xf32> to vector<8x1xf32>
    %41 = vector.broadcast %40 : vector<8x1xf32> to vector<8x128xf32>
    %42 = arith.cmpf oeq, %38, %41 : vector<8x128xf32>
    %cst_13 = arith.constant 1.280000e+02 : f32
    %43 = vector.broadcast %cst_13 : f32 to vector<8x128xf32>
    %44 = arith.select %42, %2, %43 : vector<8x128xi1>, vector<8x128xf32>
    %cst_14 = arith.constant dense<0x7F800000> : vector<8xf32>
    %45 = vector.multi_reduction <minimumf>, %44, %cst_14 [1] : vector<8x128xf32> to vector<8xf32>
    %46 = vector.shape_cast %45 : vector<8xf32> to vector<8x1xf32>
    %47 = vector.broadcast %4 : vector<8x1xf32> to vector<8x128xf32>
    %48 = arith.subf %0, %47 : vector<8x128xf32>
    %49 = math.exp %48 : vector<8x128xf32>
    %cst_15 = arith.constant dense<0.000000e+00> : vector<8xf32>
    %50 = vector.multi_reduction <add>, %49, %cst_15 [1] : vector<8x128xf32> to vector<8xf32>
    %51 = vector.shape_cast %50 : vector<8xf32> to vector<8x1xf32>
    %52 = tpu.concatenate %4, %16, %28, %40 in 1 : vector<8x1xf32>, vector<8x1xf32>, vector<8x1xf32>, vector<8x1xf32> -> vector<8x4xf32>
    %53 = tpu.concatenate %10, %22, %34, %46 in 1 : vector<8x1xf32>, vector<8x1xf32>, vector<8x1xf32>, vector<8x1xf32> -> vector<8x4xf32>
    %54 = vector.broadcast %4 : vector<8x1xf32> to vector<8x4xf32>
    %55 = arith.subf %52, %54 : vector<8x4xf32>
    %56 = math.exp %55 : vector<8x4xf32>
    %57 = vector.broadcast %51 : vector<8x1xf32> to vector<8x4xf32>
    %58 = arith.divf %56, %57 : vector<8x4xf32>
    %c0_16 = arith.constant 0 : index
    %c0_17 = arith.constant 0 : index
    %59 = vector.load %arg2[%c0_16, %c0_17] : memref<8x4xf32, #tpu.memory_space<vmem>>, vector<8x4xf32>
    tpu.vector_store %arg2[%c0_16, %c0_17], %58 {strides = array<i32>} : memref<8x4xf32, #tpu.memory_space<vmem>>, vector<8x4xf32>,
    %c0_18 = arith.constant 0 : index
    %c0_19 = arith.constant 0 : index
    %60 = vector.load %arg3[%c0_18, %c0_19] : memref<8x4xf32, #tpu.memory_space<vmem>>, vector<8x4xf32>
    tpu.vector_store %arg3[%c0_18, %c0_19], %53 {strides = array<i32>} : memref<8x4xf32, #tpu.memory_space<vmem>>, vector<8x4xf32>,
    return
  }
  func.func @transform_0(%arg0: i32) -> (i32, i32) {
    %c0_i32 = arith.constant 0 : i32
    %c0_i32_0 = arith.constant 0 : i32
    return %arg0, %c0_i32 : i32, i32
  }
  func.func @transform_1(%arg0: i32) -> (i32, i32) {
    %c0_i32 = arith.constant 0 : i32
    %c0_i32_0 = arith.constant 0 : i32
    return %arg0, %c0_i32 : i32, i32
  }
  func.func @transform_2(%arg0: i32) -> (i32, i32) {
    %c0_i32 = arith.constant 0 : i32
    %c0_i32_0 = arith.constant 0 : i32
    return %arg0, %c0_i32 : i32, i32
  }
}

</mosaic_0001>

<bundles_post_ra>
// kernel: tpu_custom_call.1
= control target key start
LH: loop header
LB: loop body
LE: loop exit
PB: predicated region body
PF: predicated region fallthrough
CT: control target
= control target key end

     0   :  { %8 = vsyncpa [#allocation3], 0  ;;  %s567_s0 = inlined_call_operand.hbm [shape: f32[16,128], index: 0, kind: input, shape index: {}]   ;;  %s568_s1 = inlined_call_operand.vmem [shape: f32[16,4], index: 1, kind: output, shape index: {0}]   ;;  %s569_s2 = inlined_call_operand.vmem [shape: f32[16,4], index: 2, kind: output, shape index: {1}]  }
   0x1   :  { %10 = vsyncpa [#allocation3 + $0x1], 0  ;;  %s458_s9 = smov 0   ;;  %s460_s10 = smov 0  }
   0x2   :  { %s462_s11 = smov 0   ;;  %s464_s12 = smov 0  }
   0x3 LB: > { %s477_s13 = sadd.s32 4294967295, %s440_s12   ;;  %s480_s14 = sadd.s32 1, %s440_s12   ;;  %s440_s12 = sphi %s464_s12, %s579_s12   ;;  %s436_s11 = sphi %s462_s11, %s578_s11   ;;  %s432_s10 = sphi %s460_s10, %s577_s10   ;;  %s428_s9 = sphi %s458_s9, %s576_s9  }
   0x4   : > { %s20_s15 = ssub.s32 %s440_s12, %s480_s14  ;;  %s23_s16 = sadd.s32 1, %s436_s11 }
   0x5   : > { %p21_p0 = scmp.eq.s32.totalorder %s20_s15, 0  ;;  %p30_p1 = scmp.ne.s32.totalorder %s436_s11, %s432_s10 }
   0x6   : > { %p31_p2 = scmp.eq.s32.totalorder %s440_s12, 0  ;;  %p36_p3 = scmp.ne.s32.totalorder %s432_s10, %s428_s9 }
   0x7   : > { %s490_s17 = scalar_select %p21_p0, %s436_s11, %s23_s16  }
   0x8   : > { %p32_p4 = por %p31_p2, %p30_p1  ;;  %p37_p5 = scmp.eq.s32.totalorder %s477_s13, 0 }
   0x9   : > { %p339_p6 = scmp.lt.s32.totalorder %s440_s12, 2  ;;  %s112_s19 = sand.u32 1, %s436_s11  }
   0xa   : > { %p494_p7 = por %p37_p5, %p36_p3  ;;  %s325_s20 = sshll.u32 %s112_s19, 3 }
   0xb   : > { %s326_s21 = sshll.u32 %s440_s12, 7  ;;  %s116_s25 = scalar_lea.vmem [#allocation2], %s325_s20 }
   0xc   : > { %s571_s18 = scalar_select %p494_p7, 1, 0 }
   0xd   : > { %s503_s24 = scalar_lea.hbm %s567_s0, %s326_s21  ;;  %s123_s26 = sshll.u32 %s116_s25, 4  ;;  %s505_s26 = int_to_ptr.vmem [resolvable:$true] %s123_s26 }
   0xe   : > { %p507_p8 = pnand %p339_p6, %p32_p4  ;;  %s113_s28 = scalar_lea.sflag [#allocation3], %s112_s19 }
   0xf   : > { %s378_s29 = scalar_lea.hbm %s503_s24, 128  ;;  %s383_s4 = scalar_lea.hbm %s567_s0, 256 }
  0x10   : > { %p379_p11 = scmp.ne.s32.totalorder %s503_s24, %s378_s29  ;;  %p380_p12 = pneg %p507_p8 }
  0x11   : > { %p384_p1 = scmp.lt.s32.totalorder %s503_s24, %s567_s0  ;;  %p385_p2 = scmp.lt.s32.totalorder %s383_s4, %s378_s29 }
  0x12   : > { %p381_p13 = pnand %p380_p12, %p379_p11 }
  0x13   : > { %p386_p3 = por %p385_p2, %p384_p1 }
  0x14   : > { %p382_p0 = pneg %p381_p13 }
  0x16   : > { %p387_p4 = pnand %p386_p3, %p382_p0 }
  0x18   : > { %390 = shalt.err (!%p387_p4)
}
  0x19   : > { %s391_s7 = scalar_lea.vmem %s505_s26, 128  ;;  %s442_s8 = smov [#allocation2]  }
  0x1a   : > { %p392_p5 = scmp.ne.s32.totalorder %s505_s26, %s391_s7  ;;  %s396_s9 = sshll.u32 %s442_s8, 4  ;;  %s397_s9 = int_to_ptr.vmem [resolvable:$false] %s396_s9 }
  0x1b   : > { %s398_s15 = scalar_lea.vmem %s397_s9, 256  ;;  %p399_p13 = scmp.lt.s32.totalorder %s505_s26, %s397_s9 }
  0x1c   : > { %p394_p6 = pnand %p392_p5, %p380_p12  ;;  %p400_p9 = scmp.lt.s32.totalorder %s398_s15, %s391_s7 }
  0x1e   : > { %p395_p11 = pneg %p394_p6  ;;  %p401_p10 = por %p400_p9, %p399_p13 }
  0x20   : > { %p402_p7 = pnand %p401_p10, %p395_p11 }
  0x22   : > { %405 = shalt.err (!%p402_p7)
}
  0x23   : > { %338 = dma.hbm_to_vmem [thread:$0]  (!%p507_p8), %s503_s24, 128, %s505_s26, %s113_s28  }
  0x24   : > { %p573_p0 = scmp.lt.s32.totalorder %s440_s12, 3  ;;  %p574_p1 = scmp.ge.s32.totalorder %s440_s12, 1 }
  0x26   : > { %p129_p12 = pnand %p574_p1, %p573_p0 }
  0x27   : > { %s134_s16 = sand.u32 (!%p129_p12), 1, %s432_s10   ;;  %p575_p9 = scmp.ne.s32.totalorder (!%p129_p12), %s571_s18, 0 }
  0x28   : > { %132 = sbr.rel (%p129_p12) target bundleno = 1167 (0x48f), region = 24  ;;  %s328_s19 = sshll.u32 (!%p129_p12), %s134_s16, 3 }
  0x29   : > { %s135_s20 = scalar_lea.sflag (!%p129_p12), [#allocation3], %s134_s16  ;;  %s138_s21 = scalar_lea.vmem (!%p129_p12), [#allocation2], %s328_s19 }
  0x2d   : > { %423 = dma.done.wait (%p575_p9), %s135_s20, 128  }
  0x2e   : > { %425 = vsyncadd (%p575_p9), %s135_s20, 4294967168  ;;  %v170_v0 = vld [vmem:[%s138_s21] sm:$0xff]  ;;  %v171_v1 = vlaneseq  ;;  %vm209_vm6 = vcmask 7168   ;;  %vm211_vm7 = vcmask 15360   ;;  %vm213_vm8 = vcmask 23552   ;;  %p162_p7 = scmp.lt.s32.totalorder %s477_s13, 1 }
  0x2f   : > { %174 = vmax.xlane.f32.xlu0 %v170_v0  ;;  %vm223_vm10 = vcmask 31744  }
  0x30   : > { %v172_v2 = vand.u32 127, %v171_v1  ;;  %s581_s13 = smov (!%p162_p7, %s477_s13), 1 }
  0x31   : > { %s329_s12 = sshll.u32 %s581_s13, 3 }
  0x32   : > { %v173_v3 = vcvt.s32.f32 %v172_v2  ;;  %s165_s23 = scalar_lea.vmem %s568_s1, %s329_s12  ;;  %s169_s26 = scalar_lea.vmem %s569_s2, %s329_s12 }
  0xb8   : > { %v175_v4 = vpop.xlane.xlu0 %174 }
  0xb9   : > { %vm176_vm0 = vcmp.eq.f32.partialorder %v170_v0, %v175_v4  ;;  %v204_v12 = vsub.f32 %v170_v0, %v175_v4 }
  0xba   : > { %v177_v5 = vsel %vm176_vm0, %v173_v3, 128.0 }
  0xbb   : > { %178 = vmin.xlane.f32.xlu0 %v177_v5  ;;  %v205_v13 = vmul.f32 1.442695, %v204_v12 }
  0xbd   : > { %372 = vpow2.f32 %v205_v13 }
  0xca   : > { %v373_v16 = vpop.eup %372 }
 0x144   : > { %v179_v6 = vpop.xlane.xlu0 %178 }
 0x145   : > { %vm180_vm1 = vcmp.eq.f32.partialorder %v173_v3, %v179_v6 }
 0x146   : > { %v181_v7 = vsel %vm180_vm1, -inf, %v170_v0 }
 0x147   : > { %182 = vmax.xlane.f32.xlu1 %v181_v7 }
 0x1d0   : > { %v183_v8 = vpop.xlane.xlu1 %182 }
 0x1d1   : > { %vm184_vm2 = vcmp.eq.f32.partialorder %v181_v7, %v183_v8  ;;  %v210_v19 = vsel %vm209_vm6, %v175_v4, %v183_v8 }
 0x1d2   : > { %v185_v9 = vsel %vm184_vm2, %v173_v3, 128.0 }
 0x1d3   : > { %186 = vmin.xlane.f32.xlu1 %v185_v9 }
 0x25c   : > { %v187_v10 = vpop.xlane.xlu1 %186 }
 0x25d   : > { %vm188_vm3 = vcmp.eq.f32.partialorder %v173_v3, %v187_v10  ;;  %v215_v30 = vsel %vm209_vm6, %v179_v6, %v187_v10 }
 0x25e   : > { %v189_v11 = vsel %vm188_vm3, -inf, %v181_v7 }
 0x25f   : > { %190 = vmax.xlane.f32.xlu0 %v189_v11 }
 0x2e8   : > { %v191_v14 = vpop.xlane.xlu0 %190 }
 0x2e9   : > { %vm192_vm4 = vcmp.eq.f32.partialorder %v189_v11, %v191_v14  ;;  %v212_v20 = vsel %vm211_vm7, %v210_v19, %v191_v14 }
 0x2ea   : > { %v193_v15 = vsel %vm192_vm4, %v173_v3, 128.0 }
 0x2eb   : > { %194 = vmin.xlane.f32.xlu1 %v193_v15 }
 0x2ef   : > { %207 = vadd.xlane.f32.xlu1 %v373_v16 }
 0x374   : > { %v195_v17 = vpop.xlane.xlu1 %194 }
 0x375   : > { %vm196_vm5 = vcmp.eq.f32.partialorder %v173_v3, %v195_v17  ;;  %v216_v31 = vsel %vm211_vm7, %v215_v30, %v195_v17 }
 0x376   : > { %v197_v18 = vsel %vm196_vm5, -inf, %v189_v11 }
 0x377   : > { %198 = vmax.xlane.f32.xlu0 %v197_v18 }
 0x378   : > { %v208_v23 = vpop.xlane.xlu1 %207 }
 0x379   : > { %374 = vrcp.f32 %v208_v23 }
 0x386   : > { %v375_v27 = vpop.eup %374 }
 0x400   : > { %v199_v21 = vpop.xlane.xlu0 %198 }
 0x401   : > { %v214_v22 = vsel %vm213_vm8, %v212_v20, %v199_v21  ;;  %vm200_vm9 = vcmp.eq.f32.partialorder %v197_v18, %v199_v21 }
 0x402   : > { %v218_v24 = vsub.f32 %v214_v22, %v175_v4  ;;  %v201_v25 = vsel %vm200_vm9, %v173_v3, 128.0 }
 0x403   : > { %202 = vmin.xlane.f32.xlu0 %v201_v25 }
 0x404   : > { %v219_v26 = vmul.f32 1.442695, %v218_v24 }
 0x406   : > { %376 = vpow2.f32 %v219_v26 }
 0x413   : > { %v377_v28 = vpop.eup %376 }
 0x414   : > { %v222_v29 = vmul.f32 %v377_v28, %v375_v27 }
 0x416   : > { %224 = vst.msk [vmem:[%s165_s23] sm:$0xff] %vm223_vm10, %v222_v29 }
 0x48c   : > { %v203_v32 = vpop.xlane.xlu0 %202 }
 0x48d   : > { %v217_v33 = vsel %vm213_vm8, %v216_v31, %v203_v32 }
 0x48e   : > { %225 = vst.msk [vmem:[%s169_s26] sm:$0xff] %vm223_vm10, %v217_v33 }
 0x48f PF: > { %p13_p8 = scmp.ge.s32.totalorder %s480_s14, 4   ;;  %s576_s9 = smov %s432_s10 }
 0x490   : > { %s577_s10 = smov %s436_s11  ;;  %s578_s11 = smov %s490_s17 }
 0x491   : > { %s579_s12 = smov %s480_s14  ;;  %15 = sbr.rel (!%p13_p8) target bundleno = 3 (0x3), region = 76 }
 0x496   :  { %259 = vsyncpa [#allocation3], 1 }
 0x497   :  { %261 = vsyncpa [#allocation3 + $0x1], 1 }

</bundles_post_ra>
